<compile_context>
chip_gen: v6e
topology: v6e:2x2x1
jax: 0.10.0
libtpu: 0.0.40
codegen_flags: <defaults>
</compile_context>

<pallas_src>
import functools

import jax
import jax.numpy as jnp
from jax import lax
from jax.experimental import pallas as pl
from jax.experimental.pallas import tpu as pltpu

C_IN = 3
C_OUT = 6
C_OUT_PAD = 8          # pad output channels to the f32 sublane tile (8)
K = 3


def _round_up(x, m):
    return (x + m - 1) // m * m


def conv3x3_kernel(w_ref, b_ref, x_ref, o_ref, *, nb, ws, s_out):
    """Processes `nb` images per grid step with one MXU dot per image.

    w_ref : VMEM (C_OUT_PAD, K*K*C_IN)  im2col weight matrix (rows 6,7 zero)
    b_ref : VMEM (C_OUT_PAD, 1)         bias column
    x_ref : VMEM (nb, C_IN, sp)         flattened + lane-padded NCHW images
    o_ref : VMEM (nb, C_OUT, s_out)     flattened, lane-dense output (6 ch)
    """
    # Hoisted once per grid step: ref loads are not CSE'd inside loops.
    w_mat = w_ref[...]                    # (8, 27)
    bias = b_ref[...]                     # (8, 1)

    def compute_one(b, carry):
        img = x_ref[b]                    # (C_IN, sp), one aligned load
        # im2col slab: nine shifted windows stacked along the sublane axis.
        # Row order (kh, kw, ic) matches the wrapper-side weight layout.
        slab = jnp.concatenate(
            [img[:, kh * ws + kw: kh * ws + kw + s_out]
             for kh in range(K) for kw in range(K)],
            axis=0)                       # (K*K*C_IN, s_out) = (27, s_out)
        res = jnp.dot(w_mat, slab, preferred_element_type=jnp.float32)
        res = res + bias                  # bias added once, after the dot
        o_ref[b] = res[:C_OUT].astype(o_ref.dtype)
        return carry

    if nb <= 4:
        for b in range(nb):               # tiny static unroll
            compute_one(b, 0)
    else:
        lax.fori_loop(0, nb, compute_one, 0, unroll=False)


def tudui_forward(x, weight, bias):
    """Pallas equivalent of Tudui.forward (Conv2d(3, 6, 3), stride 1, no pad).

    x:      (N, 3, H, W)  NCHW
    weight: (6, 3, 3, 3)  OIHW
    bias:   (6,)
    returns (N, 6, H-2, W-2) NCHW
    """
    n, c, h, w = x.shape
    assert c == C_IN and weight.shape == (C_OUT, C_IN, K, K) and bias.shape == (C_OUT,)
    assert h >= K and w >= K, "Conv2d(3,6,3) needs H >= 3 and W >= 3"
    oh, ow = h - K + 1, w - K + 1

    # Row stride: for wide images align rows to 128 lanes so the kh offsets
    # are tile-aligned (cuts XLU rotate work ~3x); keep unpadded rows for
    # small W to avoid inflating HBM traffic.
    ws = _round_up(w, 128) if w >= 128 else w
    s_out = _round_up(oh * ws, 128)                        # output lane width
    sp = _round_up(s_out + (K - 1) * ws + (K - 1), 128)    # input lane width incl. taps

    # Generation-aware VMEM budget for batch blocking.
    try:
        vmem_cap = int(pltpu.get_tpu_info().vmem_capacity_bytes)
    except Exception:
        vmem_cap = 64 << 20            # v7x per-TC physical = smallest of v5e/v6e/v7x
    per_img_bytes = (C_IN * sp + C_OUT_PAD * s_out) * 4 * 2   # double-buffered blocks
    block_budget = min(vmem_cap // 2, 32 << 20)
    nb = int(max(1, min(n, block_budget // per_img_bytes)))
    # TODO(synk): add spatial (lane) tiling with a (2*ws+2)-lane halo for images so
    # large that even a single-image block exceeds the VMEM budget.
    steps = -(-n // nb)
    n_pad = steps * nb

    live_bytes = (K * K * C_IN + 2 * C_OUT_PAD) * s_out * 4   # im2col slab + dot result
    need = nb * per_img_bytes + live_bytes + (1 << 20)
    vmem_limit = int(min(vmem_cap * 3 // 4, max(need, 16 << 20)))

    # im2col weight matrix: w_mat[oc, (kh*K + kw)*C_IN + ic] = weight[oc, ic, kh, kw].
    w_mat = weight.astype(jnp.float32).transpose(0, 2, 3, 1).reshape(C_OUT, K * K * C_IN)
    w_mat = jnp.pad(w_mat, ((0, C_OUT_PAD - C_OUT), (0, 0)))
    b_col = jnp.pad(bias.astype(jnp.float32), (0, C_OUT_PAD - C_OUT)).reshape(C_OUT_PAD, 1)

    # Flatten spatial into the lane axis (row stride ws); zero-pad batch & lanes.
    x_p = x.astype(jnp.float32)
    if ws != w:
        x_p = jnp.pad(x_p, ((0, 0), (0, 0), (0, 0), (0, ws - w)))
    x_flat = x_p.reshape(n, C_IN, h * ws)
    x_flat = jnp.pad(x_flat, ((0, n_pad - n), (0, 0), (0, sp - h * ws)))

    kernel = functools.partial(conv3x3_kernel, nb=nb, ws=ws, s_out=s_out)

    flops = 2 * n * C_OUT * C_IN * K * K * oh * ow
    bytes_accessed = (n_pad * (C_IN * sp + C_OUT * s_out)
                      + C_OUT_PAD * (K * K * C_IN + 1)) * 4

    out_flat = pl.pallas_call(
        kernel,
        out_shape=jax.ShapeDtypeStruct((n_pad, C_OUT, s_out), x.dtype),
        grid=(steps,),
        in_specs=[
            pl.BlockSpec((C_OUT_PAD, K * K * C_IN), lambda i: (0, 0)),  # weights (resident)
            pl.BlockSpec((C_OUT_PAD, 1), lambda i: (0, 0)),             # bias
            pl.BlockSpec((nb, C_IN, sp), lambda i: (i, 0, 0)),          # nb images / step
        ],
        out_specs=pl.BlockSpec((nb, C_OUT, s_out), lambda i: (i, 0, 0)),
        compiler_params=pltpu.CompilerParams(
            dimension_semantics=("parallel",),
            vmem_limit_bytes=vmem_limit),
        cost_estimate=pl.CostEstimate(
            flops=flops, transcendentals=0, bytes_accessed=bytes_accessed),
    )(w_mat, b_col, x_flat)

    # Strip batch / lane padding and restore NCHW. Valid conv outputs live at
    # flattened positions r*ws + c with r < oh, c < ow (oh*ws <= s_out).
    out = out_flat[:n, :, :oh * ws].reshape(n, C_OUT, oh, ws)
    return out[:, :, :, :ow]


if __name__ == "__main__":
    key = jax.random.PRNGKey(0)
    kx, kwt, kb = jax.random.split(key, 3)

    # Small shapes consistent with Conv2d(3, 6, 3): N=2, C=3, H=W=16.
    x = jax.random.normal(kx, (2, C_IN, 16, 16), dtype=jnp.float32)

    # Deterministic PyTorch-style init: uniform(-k, k), k = 1/sqrt(fan_in).
    fan_in = C_IN * K * K
    limit = 1.0 / jnp.sqrt(jnp.float32(fan_in))
    weight = jax.random.uniform(kwt, (C_OUT, C_IN, K, K), jnp.float32, -limit, limit)
    bias = jax.random.uniform(kb, (C_OUT,), jnp.float32, -limit, limit)

    out = jax.block_until_ready(tudui_forward(x, weight, bias))

    # Reference check against XLA's conv (NCHW / OIHW, VALID padding).
    ref = jax.lax.conv_general_dilated(
        x, weight, window_strides=(1, 1), padding="VALID",
        dimension_numbers=("NCHW", "OIHW", "NCHW")) + bias[None, :, None, None]
    assert out.shape == (2, C_OUT, 14, 14)
    assert jnp.allclose(out, ref, atol=1e-4, rtol=1e-4)

    print("KERNEL_OK")
</pallas_src>

<mosaic_0001>
module attributes {stable_mosaic.version = 11 : i64} {
  func.func @conv3x3_kernel(%arg0: i32, %arg1: memref<8x27xf32, #tpu.memory_space<vmem>>, %arg2: memref<8x1xf32, #tpu.memory_space<vmem>>, %arg3: memref<2x3x384xf32, #tpu.memory_space<vmem>>, %arg4: memref<2x6x256xf32, #tpu.memory_space<vmem>>) attributes {dimension_semantics = [#tpu.dimension_semantics<parallel>], iteration_bounds = array<i64: 1>, scalar_prefetch = 0 : i64, scratch_operands = 0 : i64, tpu.core_type = #tpu.core_type<tc>, window_params = [{pipeline_mode = #tpu.pipeline_mode<synchronous>, transform_indices = @transform_0, window_bounds = array<i64: 8, 27>}, {pipeline_mode = #tpu.pipeline_mode<synchronous>, transform_indices = @transform_1, window_bounds = array<i64: 8, 1>}, {transform_indices = @transform_2, window_bounds = array<i64: 2, 3, 384>}, {transform_indices = @transform_3, window_bounds = array<i64: 2, 6, 256>}]} {
    %c0 = arith.constant 0 : index
    %c0_0 = arith.constant 0 : index
    %0 = vector.load %arg1[%c0, %c0_0] : memref<8x27xf32, #tpu.memory_space<vmem>>, vector<8x27xf32>
    %c0_1 = arith.constant 0 : index
    %c0_2 = arith.constant 0 : index
    %1 = vector.load %arg2[%c0_1, %c0_2] : memref<8x1xf32, #tpu.memory_space<vmem>>, vector<8x1xf32>
    %c0_3 = arith.constant 0 : index
    %c0_4 = arith.constant 0 : index
    %c0_5 = arith.constant 0 : index
    %2 = vector.load %arg3[%c0_3, %c0_4, %c0_5] : memref<2x3x384xf32, #tpu.memory_space<vmem>>, vector<1x3x384xf32>
    %3 = vector.shape_cast %2 : vector<1x3x384xf32> to vector<3x384xf32>
    %4 = vector.extract_strided_slice %3 {offsets = [0, 0], sizes = [3, 256], strides = [1, 1]} : vector<3x384xf32> to vector<3x256xf32>
    %5 = vector.extract_strided_slice %3 {offsets = [0, 1], sizes = [3, 256], strides = [1, 1]} : vector<3x384xf32> to vector<3x256xf32>
    %6 = vector.extract_strided_slice %3 {offsets = [0, 2], sizes = [3, 256], strides = [1, 1]} : vector<3x384xf32> to vector<3x256xf32>
    %7 = vector.extract_strided_slice %3 {offsets = [0, 16], sizes = [3, 256], strides = [1, 1]} : vector<3x384xf32> to vector<3x256xf32>
    %8 = vector.extract_strided_slice %3 {offsets = [0, 17], sizes = [3, 256], strides = [1, 1]} : vector<3x384xf32> to vector<3x256xf32>
    %9 = vector.extract_strided_slice %3 {offsets = [0, 18], sizes = [3, 256], strides = [1, 1]} : vector<3x384xf32> to vector<3x256xf32>
    %10 = vector.extract_strided_slice %3 {offsets = [0, 32], sizes = [3, 256], strides = [1, 1]} : vector<3x384xf32> to vector<3x256xf32>
    %11 = vector.extract_strided_slice %3 {offsets = [0, 33], sizes = [3, 256], strides = [1, 1]} : vector<3x384xf32> to vector<3x256xf32>
    %12 = vector.extract_strided_slice %3 {offsets = [0, 34], sizes = [3, 256], strides = [1, 1]} : vector<3x384xf32> to vector<3x256xf32>
    %13 = tpu.concatenate %4, %5, %6, %7, %8, %9, %10, %11, %12 in 0 : vector<3x256xf32>, vector<3x256xf32>, vector<3x256xf32>, vector<3x256xf32>, vector<3x256xf32>, vector<3x256xf32>, vector<3x256xf32>, vector<3x256xf32>, vector<3x256xf32> -> vector<27x256xf32>
    %cst = arith.constant dense<0.000000e+00> : vector<8x256xf32>
    %14 = tpu.matmul %0, %13, %cst {dimension_numbers = #tpu.dot_dimension_numbers<[1], [0], [0], [1], [0, 0, 1, 1], [], []>} : vector<8x27xf32>, vector<27x256xf32>, vector<8x256xf32> -> vector<8x256xf32>
    %15 = vector.broadcast %1 : vector<8x1xf32> to vector<8x256xf32>
    %16 = arith.addf %14, %15 : vector<8x256xf32>
    %17 = vector.extract_strided_slice %16 {offsets = [0, 0], sizes = [6, 256], strides = [1, 1]} : vector<8x256xf32> to vector<6x256xf32>
    %c0_6 = arith.constant 0 : index
    %c0_7 = arith.constant 0 : index
    %c0_8 = arith.constant 0 : index
    %18 = vector.load %arg4[%c0_6, %c0_7, %c0_8] : memref<2x6x256xf32, #tpu.memory_space<vmem>>, vector<1x6x256xf32>
    %19 = vector.shape_cast %18 : vector<1x6x256xf32> to vector<6x256xf32>
    %20 = vector.shape_cast %17 : vector<6x256xf32> to vector<1x6x256xf32>
    tpu.vector_store %arg4[%c0_6, %c0_7, %c0_8], %20 {strides = array<i32>} : memref<2x6x256xf32, #tpu.memory_space<vmem>>, vector<1x6x256xf32>,
    %c1 = arith.constant 1 : index
    %c0_9 = arith.constant 0 : index
    %c0_10 = arith.constant 0 : index
    %21 = vector.load %arg3[%c1, %c0_9, %c0_10] : memref<2x3x384xf32, #tpu.memory_space<vmem>>, vector<1x3x384xf32>
    %22 = vector.shape_cast %21 : vector<1x3x384xf32> to vector<3x384xf32>
    %23 = vector.extract_strided_slice %22 {offsets = [0, 0], sizes = [3, 256], strides = [1, 1]} : vector<3x384xf32> to vector<3x256xf32>
    %24 = vector.extract_strided_slice %22 {offsets = [0, 1], sizes = [3, 256], strides = [1, 1]} : vector<3x384xf32> to vector<3x256xf32>
    %25 = vector.extract_strided_slice %22 {offsets = [0, 2], sizes = [3, 256], strides = [1, 1]} : vector<3x384xf32> to vector<3x256xf32>
    %26 = vector.extract_strided_slice %22 {offsets = [0, 16], sizes = [3, 256], strides = [1, 1]} : vector<3x384xf32> to vector<3x256xf32>
    %27 = vector.extract_strided_slice %22 {offsets = [0, 17], sizes = [3, 256], strides = [1, 1]} : vector<3x384xf32> to vector<3x256xf32>
    %28 = vector.extract_strided_slice %22 {offsets = [0, 18], sizes = [3, 256], strides = [1, 1]} : vector<3x384xf32> to vector<3x256xf32>
    %29 = vector.extract_strided_slice %22 {offsets = [0, 32], sizes = [3, 256], strides = [1, 1]} : vector<3x384xf32> to vector<3x256xf32>
    %30 = vector.extract_strided_slice %22 {offsets = [0, 33], sizes = [3, 256], strides = [1, 1]} : vector<3x384xf32> to vector<3x256xf32>
    %31 = vector.extract_strided_slice %22 {offsets = [0, 34], sizes = [3, 256], strides = [1, 1]} : vector<3x384xf32> to vector<3x256xf32>
    %32 = tpu.concatenate %23, %24, %25, %26, %27, %28, %29, %30, %31 in 0 : vector<3x256xf32>, vector<3x256xf32>, vector<3x256xf32>, vector<3x256xf32>, vector<3x256xf32>, vector<3x256xf32>, vector<3x256xf32>, vector<3x256xf32>, vector<3x256xf32> -> vector<27x256xf32>
    %cst_11 = arith.constant dense<0.000000e+00> : vector<8x256xf32>
    %33 = tpu.matmul %0, %32, %cst_11 {dimension_numbers = #tpu.dot_dimension_numbers<[1], [0], [0], [1], [0, 0, 1, 1], [], []>} : vector<8x27xf32>, vector<27x256xf32>, vector<8x256xf32> -> vector<8x256xf32>
    %34 = vector.broadcast %1 : vector<8x1xf32> to vector<8x256xf32>
    %35 = arith.addf %33, %34 : vector<8x256xf32>
    %36 = vector.extract_strided_slice %35 {offsets = [0, 0], sizes = [6, 256], strides = [1, 1]} : vector<8x256xf32> to vector<6x256xf32>
    %c1_12 = arith.constant 1 : index
    %c0_13 = arith.constant 0 : index
    %c0_14 = arith.constant 0 : index
    %37 = vector.load %arg4[%c1_12, %c0_13, %c0_14] : memref<2x6x256xf32, #tpu.memory_space<vmem>>, vector<1x6x256xf32>
    %38 = vector.shape_cast %37 : vector<1x6x256xf32> to vector<6x256xf32>
    %39 = vector.shape_cast %36 : vector<6x256xf32> to vector<1x6x256xf32>
    tpu.vector_store %arg4[%c1_12, %c0_13, %c0_14], %39 {strides = array<i32>} : memref<2x6x256xf32, #tpu.memory_space<vmem>>, vector<1x6x256xf32>,
    return
  }
  func.func @transform_0(%arg0: i32) -> (i32, i32) {
    %c0_i32 = arith.constant 0 : i32
    %c0_i32_0 = arith.constant 0 : i32
    %c0_i32_1 = arith.constant 0 : i32
    return %c0_i32, %c0_i32_0 : i32, i32
  }
  func.func @transform_1(%arg0: i32) -> (i32, i32) {
    %c0_i32 = arith.constant 0 : i32
    %c0_i32_0 = arith.constant 0 : i32
    %c0_i32_1 = arith.constant 0 : i32
    return %c0_i32, %c0_i32_0 : i32, i32
  }
  func.func @transform_2(%arg0: i32) -> (i32, i32, i32) {
    %c0_i32 = arith.constant 0 : i32
    %c0_i32_0 = arith.constant 0 : i32
    %c0_i32_1 = arith.constant 0 : i32
    return %arg0, %c0_i32, %c0_i32_0 : i32, i32, i32
  }
  func.func @transform_3(%arg0: i32) -> (i32, i32, i32) {
    %c0_i32 = arith.constant 0 : i32
    %c0_i32_0 = arith.constant 0 : i32
    %c0_i32_1 = arith.constant 0 : i32
    return %arg0, %c0_i32, %c0_i32_0 : i32, i32, i32
  }
}

</mosaic_0001>

<bundles_post_ra>
// kernel: tpu_custom_call.1
= control target key start
LH: loop header
LB: loop body
LE: loop exit
PB: predicated region body
PF: predicated region fallthrough
CT: control target
= control target key end

     0   :  { %s463_s16 = smov 96   ;;  %s464_s17 = smov 110   ;;  %v470_v42 = vmov 0.0   ;;  %v472_v45 = vmov 0   ;;  %vm125_vm0 = vcmask 769024   ;;  %vm128_vm1 = vcmask 1042432   ;;  %s723_s2 = inlined_call_operand.vmem [shape: f32[2,3,384], index: 2, kind: input, shape index: {}]   ;;  %s724_s1 = inlined_call_operand.vmem [shape: f32[8,1], index: 1, kind: input, shape index: {}]   ;;  %s725_s0 = inlined_call_operand.vmem [shape: f32[8,27], index: 0, kind: input, shape index: {}]   ;;  %s726_s3 = inlined_call_operand.vmem [shape: f32[2,6,256], index: 3, kind: output, shape index: {}]  }
   0x1   :  { %v496_v0 = vld [vmem:[%s723_s2 + $0x8] sm:$0x7]  ;;  %v501_v1 = vld [vmem:[%s723_s2] sm:$0x77]  ;;  %v516_v7 = vld [vmem:[%s723_s2 + $0xc] sm:$0x77]  ;;  %226 = vmatprep.mubr.f32.mxu0 %v470_v42  ;;  %422 = vmatprep.mubr.f32.mxu1 %v470_v42 }
   0x2   :  { %v93_v2 = vrot.slane %v496_v0, 6  ;;  %v79_v3 = vrot.slane %v496_v0, 1  ;;  %v507_v4 = vcombine.high %v501_v1, %v501_v1  ;;  %v522_v8 = vcombine.high %v516_v7, %v516_v7  ;;  %v527_v9 = vld [vmem:[%s723_s2 + $0x14] sm:$0x7]  ;;  %s465_s22 = smov 94   ;;  %s466_s2 = smov 126   ;;  %456 = vset.pattern.permute.xlu0 %v472_v45 }
   0x3   :  { %v295_v10 = vrot.slane %v527_v9, 1  ;;  %v308_v12 = vrot.slane %v527_v9, 6  ;;  %v38_v14 = vrot.slane %v496_v0, 2  ;;  %v52_v16 = vrot.slane %v496_v0, 7  ;;  %s467_s23 = smov 112   ;;  %s468_s24 = smov 95  }
   0x4   :  { %98 = vrot.lane.b32.xlu1 %v93_v2, %s463_s16  ;;  %84 = vrot.lane.b32.xlu0 %v79_v3, %s464_s17  ;;  %v92_v5 = vrot.slane %v507_v4, 6  ;;  %v78_v6 = vrot.slane %v507_v4, 1  ;;  %v294_v11 = vrot.slane %v522_v8, 1  ;;  %v307_v13 = vrot.slane %v522_v8, 6  ;;  %s469_s25 = smov 111   ;;  %s471_s26 = smov 127  }
   0x5   :  { %v37_v15 = vrot.slane %v507_v4, 2  ;;  %v51_v17 = vrot.slane %v507_v4, 7  ;;  %v91_v18 = vrot.slane %v501_v1, 6  ;;  %v77_v19 = vrot.slane %v501_v1, 1  ;;  %v15_v48 = vld [vmem:[%s724_s1] sm:$0xff] }
   0x6   :  { %v107_v20 = vrot.slane %v496_v0, 3  ;;  %v106_v21 = vrot.slane %v507_v4, 3  ;;  %v256_v22 = vrot.slane %v522_v8, 2  ;;  %v269_v23 = vrot.slane %v522_v8, 7 }
   0x7   :  { %v257_v24 = vrot.slane %v527_v9, 2  ;;  %v293_v25 = vrot.slane %v516_v7, 1  ;;  %v270_v26 = vrot.slane %v527_v9, 7  ;;  %v320_v27 = vrot.slane %v522_v8, 3 }
   0x8   :  { %96 = vrot.lane.b32.xlu1 %v92_v5, %s463_s16  ;;  %82 = vrot.lane.b32.xlu0 %v78_v6, %s464_s17  ;;  %v306_v28 = vrot.slane %v516_v7, 6  ;;  %v321_v29 = vrot.slane %v527_v9, 3  ;;  %v50_v30 = vrot.slane %v501_v1, 7  ;;  %v36_v31 = vrot.slane %v501_v1, 2 }
   0x9   :  { %v65_v32 = vcombine.low %v496_v0, %v496_v0  ;;  %v255_v33 = vrot.slane %v516_v7, 2  ;;  %v105_v34 = vrot.slane %v501_v1, 3  ;;  %v268_v35 = vrot.slane %v516_v7, 7 }
   0xa   :  { %v319_v36 = vrot.slane %v516_v7, 3  ;;  %v282_v37 = vcombine.low %v527_v9, %v527_v9  ;;  %v281_v38 = vcombine.low %v516_v7, %v516_v7  ;;  %v64_v39 = vcombine.low %v501_v1, %v501_v1 }
   0xb   :  { %v24_v40 = vrot.slane %v496_v0, 5  ;;  %v23_v41 = vrot.slane %v507_v4, 5  ;;  %v244_v43 = vrot.slane %v527_v9, 5  ;;  %v243_v44 = vrot.slane %v522_v8, 5 }
   0xc   :  { %123 = vrot.lane.b32.xlu1 %v496_v0, %s465_s22  ;;  %121 = vrot.lane.b32.xlu0 %v507_v4, %s465_s22  ;;  %v242_v46 = vrot.slane %v516_v7, 5  ;;  %v22_v47 = vrot.slane %v501_v1, 5  ;;  %vm100_vm2 = vcmask 785408   ;;  %vm86_vm3 = vcmask 900096  }
   0xd   :  { %vm114_vm4 = vcmask 777216   ;;  %vm143_vm5 = vcmask 1041408   ;;  %vm146_vm6 = vcmask 1044480   ;;  %vm59_vm7 = vcmask 916480  }
   0xe   :  { %vm72_vm8 = vcmask 908288   ;;  %vm45_vm9 = vcmask 1031168   ;;  %vm134_vm10 = vcmask 1040384   ;;  %vm137_vm11 = vcmask 1043456  }
   0xf   :  { %vm140_vm12 = vcmask 1046528   ;;  %vm31_vm13 = vcmask 1039360   ;;  %vm131_vm14 = vcmask 1045504   ;;  %vm154_vm15 = vcmask 220160  }
  0x10   :  { %300 = vrot.lane.b32.xlu1 %v295_v10, %s464_s17  ;;  %298 = vrot.lane.b32.xlu0 %v294_v11, %s464_s17 }
  0x14   :  { %313 = vrot.lane.b32.xlu1 %v308_v12, %s463_s16  ;;  %311 = vrot.lane.b32.xlu0 %v307_v13, %s463_s16 }
  0x18   :  { %336 = vrot.lane.b32.xlu1 %v527_v9, %s465_s22  ;;  %334 = vrot.lane.b32.xlu0 %v522_v8, %s465_s22 }
  0x1c   :  { %43 = vrot.lane.b32.xlu1 %v38_v14, %s466_s2  ;;  %41 = vrot.lane.b32.xlu0 %v37_v15, %s466_s2 }
  0x20   :  { %57 = vrot.lane.b32.xlu1 %v52_v16, %s467_s23  ;;  %55 = vrot.lane.b32.xlu0 %v51_v17, %s467_s23 }
  0x24   :  { %94 = vrot.lane.b32.xlu1 %v91_v18, %s463_s16  ;;  %80 = vrot.lane.b32.xlu0 %v77_v19, %s464_s17 }
  0x28   :  { %112 = vrot.lane.b32.xlu1 %v107_v20, %s468_s24  ;;  %110 = vrot.lane.b32.xlu0 %v106_v21, %s468_s24 }
  0x2c   :  { %260 = vrot.lane.b32.xlu1 %v256_v22, %s466_s2  ;;  %119 = vrot.lane.b32.xlu0 %v501_v1, %s465_s22 }
  0x30   :  { %273 = vrot.lane.b32.xlu1 %v269_v23, %s467_s23  ;;  %262 = vrot.lane.b32.xlu0 %v257_v24, %s466_s2 }
  0x34   :  { %296 = vrot.lane.b32.xlu1 %v293_v25, %s464_s17  ;;  %275 = vrot.lane.b32.xlu0 %v270_v26, %s467_s23 }
  0x38   :  { %324 = vrot.lane.b32.xlu1 %v320_v27, %s468_s24  ;;  %309 = vrot.lane.b32.xlu0 %v306_v28, %s463_s16 }
  0x3c   :  { %332 = vrot.lane.b32.xlu1 %v516_v7, %s465_s22  ;;  %326 = vrot.lane.b32.xlu0 %v321_v29, %s468_s24 }
  0x40   :  { %53 = vrot.lane.b32.xlu1 %v50_v30, %s467_s23  ;;  %39 = vrot.lane.b32.xlu0 %v36_v31, %s466_s2 }
  0x44   :  { %70 = vrot.lane.b32.xlu1 %v65_v32, %s469_s25  ;;  %68 = vrot.lane.b32.xlu0 %v501_v1, %s469_s25 }
  0x48   :  { %258 = vrot.lane.b32.xlu1 %v255_v33, %s466_s2  ;;  %108 = vrot.lane.b32.xlu0 %v105_v34, %s468_s24 }
  0x4c   :  { %285 = vrot.lane.b32.xlu1 %v516_v7, %s469_s25  ;;  %271 = vrot.lane.b32.xlu0 %v268_v35, %s467_s23 }
  0x50   :  { %322 = vrot.lane.b32.xlu1 %v319_v36, %s468_s24  ;;  %287 = vrot.lane.b32.xlu0 %v282_v37, %s469_s25 }
  0x54   :  { %283 = vrot.lane.b32.xlu1 %v281_v38, %s469_s25  ;;  %66 = vrot.lane.b32.xlu0 %v64_v39, %s469_s25 }
  0x58   :  { %29 = vrot.lane.b32.xlu1 %v24_v40, %s471_s26  ;;  %27 = vrot.lane.b32.xlu0 %v23_v41, %s471_s26 }
  0x5c   :  { %249 = vrot.lane.b32.xlu1 %v244_v43, %s471_s26  ;;  %247 = vrot.lane.b32.xlu0 %v243_v44, %s471_s26 }
  0x60   :  { %245 = vrot.lane.b32.xlu1 %v242_v46, %s471_s26  ;;  %25 = vrot.lane.b32.xlu0 %v22_v47, %s471_s26 }
  0x64   :  { %151 = vperm.xlu0 %456, %v15_v48  }
  0x76   :  { %v99_v49 = vpop.permute.xlu1 %98  ;;  %v85_v50 = vpop.permute.xlu0 %84 }
  0x7a   :  { %v612_v51 = vpop.permute.xlu1 %96  ;;  %v614_v52 = vpop.permute.xlu0 %82 }
  0x7b   :  { %v102_v11 = vsel %vm100_vm2, %v612_v51, %v99_v49  ;;  %v88_v12 = vsel %vm86_vm3, %v614_v52, %v85_v50 }
  0x7c   :  { %v145_v17 = vsel %vm143_vm5, %v88_v12, %v102_v11 }
  0x7e   :  { %v124_v53 = vpop.permute.xlu1 %123  ;;  %v122_v54 = vpop.permute.xlu0 %121 }
  0x7f   :  { %v127_v55 = vsel %vm125_vm0, %v122_v54, %v124_v53 }
  0x80   :  { %436 = vmatprep.subr.msk.mxu0 %vm128_vm1, %v127_v55 }
  0x82   :  { %v301_v56 = vpop.permute.xlu1 %300  ;;  %v618_v57 = vpop.permute.xlu0 %298 }
  0x83   :  { %v303_v26 = vsel %vm86_vm3, %v618_v57, %v301_v56 }
  0x86   :  { %v314_v58 = vpop.permute.xlu1 %313  ;;  %v620_v59 = vpop.permute.xlu0 %311 }
  0x87   :  { %v316_v25 = vsel %vm100_vm2, %v620_v59, %v314_v58 }
  0x88   :  { %v351_v31 = vsel %vm143_vm5, %v303_v26, %v316_v25 }
  0x8a   :  { %v337_v60 = vpop.permute.xlu1 %336  ;;  %v335_v61 = vpop.permute.xlu0 %334 }
  0x8b   :  { %v339_v62 = vsel %vm125_vm0, %v335_v61, %v337_v60 }
  0x8c   :  { %441 = vmatprep.subr.msk.mxu1 %vm128_vm1, %v339_v62 }
  0x8e   :  { %v44_v63 = vpop.permute.xlu1 %43  ;;  %v624_v0 = vpop.permute.xlu0 %41 }
  0x8f   :  { %v47_v39 = vsel %vm45_vm9, %v624_v0, %v44_v63 }
  0x92   :  { %v58_v2 = vpop.permute.xlu1 %57  ;;  %v626_v3 = vpop.permute.xlu0 %55 }
  0x93   :  { %v61_v35 = vsel %vm59_vm7, %v626_v3, %v58_v2 }
  0x94   :  { %v136_v42 = vsel %vm134_vm10, %v47_v39, %v61_v35 }
  0x96   :  { %v95_v5 = vpop.permute.xlu1 %94  ;;  %v81_v6 = vpop.permute.xlu0 %80 }
  0x97   :  { %v101_v40 = vsel %vm100_vm2, %v95_v5, %v612_v51  ;;  %v87_v41 = vsel %vm86_vm3, %v81_v6, %v614_v52 }
  0x98   :  { %v144_v47 = vsel %vm143_vm5, %v87_v41, %v101_v40 }
  0x9a   :  { %v113_v9 = vpop.permute.xlu1 %112  ;;  %v111_v10 = vpop.permute.xlu0 %110 }
  0x9b   :  { %v116_v13 = vsel %vm114_vm4, %v111_v10, %v113_v9 }
  0x9c   :  { %v148_v18 = vsel %vm146_vm6, %v145_v17, %v116_v13 }
  0x9e   :  { %v633_v14 = vpop.permute.xlu1 %260  ;;  %v120_v15 = vpop.permute.xlu0 %119 }
  0x9f   :  { %v126_v16 = vsel %vm125_vm0, %v120_v15, %v122_v54 }
  0xa0   :  { %437 = vmatpush1.msk.msra.mxu0 %vm128_vm1, %v126_v16 }
  0xa1   :  { %188 = vmatprep.subr.mxu0 %v148_v18 }
  0xa2   :  { %v274_v19 = vpop.permute.xlu1 %273  ;;  %v263_v20 = vpop.permute.xlu0 %262 }
  0xa3   :  { %v265_v54 = vsel %vm45_vm9, %v633_v14, %v263_v20 }
  0xa6   :  { %v297_v21 = vpop.permute.xlu1 %296  ;;  %v276_v22 = vpop.permute.xlu0 %275 }
  0xa7   :  { %v278_v52 = vsel %vm59_vm7, %v274_v19, %v276_v22  ;;  %v302_v55 = vsel %vm86_vm3, %v297_v21, %v618_v57 }
  0xa8   :  { %v345_v56 = vsel %vm134_vm10, %v265_v54, %v278_v52 }
  0xaa   :  { %v325_v23 = vpop.permute.xlu1 %324  ;;  %v310_v24 = vpop.permute.xlu0 %309 }
  0xab   :  { %v315_v53 = vsel %vm100_vm2, %v310_v24, %v620_v59 }
  0xac   :  { %v350_v2 = vsel %vm143_vm5, %v302_v55, %v315_v53 }
  0xae   :  { %v333_v27 = vpop.permute.xlu1 %332  ;;  %v327_v28 = vpop.permute.xlu0 %326 }
  0xaf   :  { %v329_v29 = vsel %vm114_vm4, %v325_v23, %v327_v28  ;;  %v338_v30 = vsel %vm125_vm0, %v333_v27, %v335_v61 }
  0xb0   :  { %442 = vmatpush1.msk.msra.mxu1 %vm128_vm1, %v338_v30  ;;  %v353_v32 = vsel %vm146_vm6, %v351_v31, %v329_v29 }
  0xb1   :  { %384 = vmatprep.subr.mxu1 %v353_v32 }
  0xb2   :  { %v54_v33 = vpop.permute.xlu1 %53  ;;  %v40_v34 = vpop.permute.xlu0 %39 }
  0xb3   :  { %v60_v61 = vsel %vm59_vm7, %v54_v33, %v626_v3  ;;  %v46_v59 = vsel %vm45_vm9, %v40_v34, %v624_v0  ;;  %v14_v34 = vld [vmem:[%s725_s0] sm:$0xff] }
  0xb6   :  { %v71_v36 = vpop.permute.xlu1 %70  ;;  %v69_v37 = vpop.permute.xlu0 %68 }
  0xb7   :  { %v74_v38 = vsel %vm72_vm8, %v69_v37, %v71_v36 }
  0xb8   :  { %v139_v45 = vsel %vm137_vm11, %v136_v42, %v74_v38 }
  0xb9   :  { %v142_v49 = vsel %vm140_vm12, %v139_v45, %v88_v12  ;;  %v135_v12 = vsel %vm134_vm10, %v46_v59, %v60_v61 }
  0xba   :  { %v259_v43 = vpop.permute.xlu1 %258  ;;  %v109_v44 = vpop.permute.xlu0 %108 }
  0xbb   :  { %v115_v46 = vsel %vm114_vm4, %v109_v44, %v111_v10  ;;  %v264_v3 = vsel %vm45_vm9, %v259_v43, %v633_v14 }
  0xbc   :  { %v147_v48 = vsel %vm146_vm6, %v144_v47, %v115_v46 }
  0xbd   :  { %189 = vmatpush1.msra.mxu0 %v147_v48 }
  0xbe   :  { %v286_v50 = vpop.permute.xlu1 %285  ;;  %190 = vmatprep.subr.mxu0 %v142_v49  ;;  %v272_v51 = vpop.permute.xlu0 %271 }
  0xbf   :  { %v277_v5 = vsel %vm59_vm7, %v272_v51, %v274_v19 }
  0xc0   :  { %v344_v13 = vsel %vm134_vm10, %v264_v3, %v277_v5 }
  0xc2   :  { %v323_v58 = vpop.permute.xlu1 %322  ;;  %v288_v60 = vpop.permute.xlu0 %287 }
  0xc3   :  { %v328_v62 = vsel %vm114_vm4, %v323_v58, %v325_v23  ;;  %v290_v63 = vsel %vm72_vm8, %v286_v50, %v288_v60 }
  0xc4   :  { %v352_v57 = vsel %vm146_vm6, %v350_v2, %v328_v62  ;;  %v347_v6 = vsel %vm137_vm11, %v345_v56, %v290_v63 }
  0xc5   :  { %385 = vmatpush1.msra.mxu1 %v352_v57  ;;  %v349_v9 = vsel %vm140_vm12, %v347_v6, %v303_v26 }
  0xc6   :  { %v284_v10 = vpop.permute.xlu1 %283  ;;  %386 = vmatprep.subr.mxu1 %v349_v9  ;;  %v67_v11 = vpop.permute.xlu0 %66 }
  0xc7   :  { %v289_v0 = vsel %vm72_vm8, %v284_v10, %v286_v50  ;;  %v73_v15 = vsel %vm72_vm8, %v67_v11, %v69_v37 }
  0xc8   :  { %v138_v16 = vsel %vm137_vm11, %v135_v12, %v73_v15  ;;  %v346_v17 = vsel %vm137_vm11, %v344_v13, %v289_v0 }
  0xc9   :  { %v141_v18 = vsel %vm140_vm12, %v138_v16, %v87_v41  ;;  %v348_v14 = vsel %vm140_vm12, %v346_v17, %v302_v55 }
  0xca   :  { %v30_v19 = vpop.permute.xlu1 %29  ;;  %191 = vmatpush1.msra.mxu0 %v141_v18  ;;  %387 = vmatpush1.msra.mxu1 %v348_v14  ;;  %v28_v20 = vpop.permute.xlu0 %27 }
  0xcb   :  { %v33_v21 = vsel %vm31_vm13, %v28_v20, %v30_v19 }
  0xcc   :  { %v130_v22 = vsel %vm128_vm1, %v507_v4, %v33_v21 }
  0xcd   :  { %v133_v23 = vsel %vm131_vm14, %v130_v22, %v47_v39 }
  0xce   :  { %v250_v24 = vpop.permute.xlu1 %249  ;;  %192 = vmatprep.subr.mxu0 %v133_v23  ;;  %v248_v25 = vpop.permute.xlu0 %247 }
  0xcf   :  { %v252_v26 = vsel %vm31_vm13, %v248_v25, %v250_v24 }
  0xd0   :  { %v341_v27 = vsel %vm128_vm1, %v522_v8, %v252_v26 }
  0xd1   :  { %v343_v28 = vsel %vm131_vm14, %v341_v27, %v265_v54 }
  0xd2   :  { %v246_v29 = vpop.permute.xlu1 %245  ;;  %388 = vmatprep.subr.mxu1 %v343_v28  ;;  %v26_v30 = vpop.permute.xlu0 %25 }
  0xd3   :  { %v251_v31 = vsel %vm31_vm13, %v246_v29, %v248_v25  ;;  %v32_v32 = vsel %vm31_vm13, %v26_v30, %v28_v20 }
  0xd4   :  { %v129_v4 = vsel %vm128_vm1, %v501_v1, %v32_v32  ;;  %v340_v33 = vsel %vm128_vm1, %v516_v7, %v251_v31 }
  0xd5   :  { %v132_v8 = vsel %vm131_vm14, %v129_v4, %v46_v59  ;;  %v342_v35 = vsel %vm131_vm14, %v340_v33, %v264_v3 }
  0xd6   :  { %193 = vmatpush1.msra.mxu0 %v132_v8  ;;  %389 = vmatpush1.msra.mxu1 %v342_v35 }
  0xd7   :  { %438 = vmatmul.mubr.msk.f32.vlgmr.msra.gmra.mxu0 %vm154_vm15, %v14_v34  ;;  %443 = vmatmul.mubr.msk.f32.vlgmr.msra.gmra.mxu1 %vm154_vm15, %v14_v34 }
  0xdf   :  { %v152_v36 = vpop.permute.xlu0 %151 }
 0x197   :  { %v228_v37 = vpop.f32.mrf.mxu0  ;;  %v424_v38 = vpop.f32.mrf.mxu1 }
 0x198   :  { %v229_v1 = vadd.f32 %v228_v37, %v152_v36  ;;  %v425_v39 = vadd.f32 %v424_v38, %v152_v36 }
 0x199   :  { %v230_v40 = vpop.f32.mrf.mxu0  ;;  %v426_v7 = vpop.f32.mrf.mxu1 }
 0x19a   :  { %233 = vst [vmem:[%s726_s3] sm:$0x3f] %v229_v1  ;;  %444 = vst [vmem:[%s726_s3 + $0x10] sm:$0x3f] %v425_v39  ;;  %v231_v41 = vadd.f32 %v230_v40, %v152_v36  ;;  %v427_v42 = vadd.f32 %v426_v7, %v152_v36 }
 0x19c   :  { %234 = vst [vmem:[%s726_s3 + $0x8] sm:$0x3f] %v231_v41  ;;  %445 = vst [vmem:[%s726_s3 + $0x18] sm:$0x3f] %v427_v42 }

</bundles_post_ra>
